<compile_context>
chip_gen: v5e
topology: v5e:2x2
jax: 0.10.0
libtpu: 0.0.40
codegen_flags: <defaults>
</compile_context>

<pallas_src>
import functools
import numpy as np
import jax
import jax.numpy as jnp
from jax.experimental import pallas as pl
from jax.experimental.pallas import tpu as pltpu


def _local_attention_mask(T1, T2, receptive_size):
    """Exact numpy port of LocalMultiHeadAttention.local_attention_mask (True == masked).
    Used only by the pure-JAX reference; the kernel regenerates it from iota."""
    R = receptive_size
    m = np.ones((T1, T2 + 1), dtype=bool)
    m = np.pad(m, ((0, 0), (R, 0)), constant_values=False)       # (T1, T2+1+R)
    m = m.reshape(T1 * (T2 + R + 1))
    m = m[: -T1].reshape(T1, T2 + R)
    m = m[:, R // 2: T2 + R // 2]                                 # (T1, T2)
    return m


def _lmha_kernel(x_ref, ctx_ref, wq_ref, wkv_ref, wo_ref, bo_ref,
                 gamma_ref, beta_ref, out_ref, *,
                 n_head, d_head, receptive_size, atten_scale, eps, matmul_dtype):
    Bb, T1, D = x_ref.shape
    _, T2, _ = ctx_ref.shape
    H, dh = n_head, d_head
    HD = H * dh
    R = receptive_size
    md = matmul_dtype

    x2d = x_ref[...].reshape(Bb * T1, D)          # f32, kept for residual / LN
    ctx2d = ctx_ref[...].reshape(Bb * T2, D)

    # Fused projections: one matmul for Q, one for K|V (2*HD wide).
    q = jnp.dot(x2d.astype(md), wq_ref[...],
                preferred_element_type=jnp.float32)                 # (Bb*T1, HD)
    kv = jnp.dot(ctx2d.astype(md), wkv_ref[...],
                 preferred_element_type=jnp.float32)                # (Bb*T2, 2*HD)

    # (Bb*H, rows, dh) batched-head stacks -> a single batched MXU stream each.
    qh = jnp.stack([q[b * T1:(b + 1) * T1, h * dh:(h + 1) * dh]
                    for b in range(Bb) for h in range(H)], axis=0).astype(md)
    kh = jnp.stack([kv[b * T2:(b + 1) * T2, h * dh:(h + 1) * dh]
                    for b in range(Bb) for h in range(H)], axis=0).astype(md)
    vh = jnp.stack([kv[b * T2:(b + 1) * T2, HD + h * dh:HD + (h + 1) * dh]
                    for b in range(Bb) for h in range(H)], axis=0).astype(md)

    # Local-window mask generated in-kernel (no HBM/VMEM traffic), exact port of
    # local_attention_mask: unmasked iff ((j - i + R//2) mod (T2+R+1)) < R.
    row = jax.lax.broadcasted_iota(jnp.int32, (T1, T2), 0)
    col = jax.lax.broadcasted_iota(jnp.int32, (T1, T2), 1)
    delta = col - row + R // 2
    m_wrap = T2 + R + 1
    lim = T1 - 1 - R // 2
    n_wraps = 0 if lim <= 0 else (lim + m_wrap - 1) // m_wrap      # static Python int
    allowed = (delta >= 0) & (delta < R)
    for k in range(1, n_wraps + 1):
        d = delta + k * m_wrap
        allowed = allowed | ((d >= 0) & (d < R))

    # Attention (all heads and packed batch elements in one batched dot each).
    s = jnp.einsum("gqd,gkd->gqk", qh, kh,
                   preferred_element_type=jnp.float32) * atten_scale
    s = jnp.where(allowed[None, :, :], s, -1e9)    # == masked_fill_(mask, -1e9)
    s = s - jnp.max(s, axis=-1, keepdims=True)
    p = jnp.exp(s)
    p = p * pl.reciprocal(jnp.sum(p, axis=-1, keepdims=True), approx=True)
    o = jnp.einsum("gqk,gkd->gqd", p.astype(md), vh,
                   preferred_element_type=jnp.float32)             # (Bb*H, T1, dh)

    # Re-pack to (Bb*T1, H*dh).
    attn = jnp.concatenate(
        [jnp.concatenate([o[b * H + h] for h in range(H)], axis=-1)
         for b in range(Bb)], axis=0)

    proj = jnp.dot(attn.astype(md), wo_ref[...],
                   preferred_element_type=jnp.float32) + bo_ref[...]
    res = x2d + proj                               # dropout == identity (eval mode)
    mu = jnp.mean(res, axis=-1, keepdims=True)
    var = jnp.mean((res - mu) ** 2, axis=-1, keepdims=True)
    y = (res - mu) * jax.lax.rsqrt(var + eps)
    y = y * gamma_ref[...] + beta_ref[...]
    out_ref[...] = y.reshape(Bb, T1, D)


def _pick_block_b(B):
    """Pack as many batch elements per grid step as possible while keeping at
    least 2 grid steps (so both v7x TensorCores get work)."""
    if B <= 1:
        return 1
    for bb in range(B // 2, 0, -1):
        if B % bb == 0:
            return bb
    return 1


def local_multi_head_attention(x, context, params, *, n_head, d_head,
                               receptive_size, block_b=None,
                               matmul_dtype=jnp.float32):
    if receptive_size % 2 == 0:
        raise ValueError("receptive size must be odd")
    B, T1, D = x.shape
    _, T2, _ = context.shape
    HD = n_head * d_head
    if block_b is None:
        block_b = _pick_block_b(B)
    assert B % block_b == 0

    md = jnp.dtype(matmul_dtype)
    wq = params["wq"].astype(md)
    wkv = jnp.concatenate([params["wk"], params["wv"]], axis=1).astype(md)
    wo = params["wo"].astype(md)

    kernel = functools.partial(
        _lmha_kernel, n_head=n_head, d_head=d_head,
        receptive_size=receptive_size, atten_scale=1.0 / (d_head ** 0.5),
        eps=1e-5, matmul_dtype=md)

    return pl.pallas_call(
        kernel,
        out_shape=jax.ShapeDtypeStruct((B, T1, D), jnp.float32),
        grid=(B // block_b,),
        in_specs=[
            pl.BlockSpec((block_b, T1, D), lambda b: (b, 0, 0)),   # x
            pl.BlockSpec((block_b, T2, D), lambda b: (b, 0, 0)),   # context
            pl.BlockSpec((D, HD), lambda b: (0, 0)),               # W_q
            pl.BlockSpec((D, 2 * HD), lambda b: (0, 0)),           # W_k | W_v fused
            pl.BlockSpec((HD, D), lambda b: (0, 0)),               # W_out
            pl.BlockSpec((1, D), lambda b: (0, 0)),                # b_out
            pl.BlockSpec((1, D), lambda b: (0, 0)),                # LN gamma
            pl.BlockSpec((1, D), lambda b: (0, 0)),                # LN beta
        ],
        out_specs=pl.BlockSpec((block_b, T1, D), lambda b: (b, 0, 0)),
        compiler_params=pltpu.CompilerParams(dimension_semantics=("parallel",)),
    )(x, context, wq, wkv, wo, params["bo"], params["gamma"], params["beta"])


def _reference(x, context, params, *, n_head, d_head, receptive_size):
    """Plain-JAX reference matching the PyTorch forward (eval mode)."""
    B, T1, D = x.shape
    _, T2, _ = context.shape
    hp = dict(preferred_element_type=jnp.float32, precision=jax.lax.Precision.HIGHEST)
    q = jnp.einsum("btd,de->bte", x, params["wq"], **hp)
    k = jnp.einsum("btd,de->bte", context, params["wk"], **hp)
    v = jnp.einsum("btd,de->bte", context, params["wv"], **hp)
    q = q.reshape(B, T1, n_head, d_head).transpose(0, 2, 1, 3)
    k = k.reshape(B, T2, n_head, d_head).transpose(0, 2, 1, 3)
    v = v.reshape(B, T2, n_head, d_head).transpose(0, 2, 1, 3)
    scores = jnp.einsum("bhqd,bhkd->bhqk", q, k, **hp) * (1.0 / d_head ** 0.5)
    mask = _local_attention_mask(T1, T2, receptive_size)
    scores = jnp.where(mask[None, None], -1e9, scores)
    attn = jax.nn.softmax(scores, axis=-1)
    out = jnp.einsum("bhqk,bhkd->bhqd", attn, v, **hp)
    out = out.transpose(0, 2, 1, 3).reshape(B, T1, n_head * d_head)
    out = jnp.einsum("bte,ed->btd", out, params["wo"], **hp) + params["bo"]
    res = x + out
    mu = jnp.mean(res, axis=-1, keepdims=True)
    var = jnp.mean((res - mu) ** 2, axis=-1, keepdims=True)
    return (res - mu) / jnp.sqrt(var + 1e-5) * params["gamma"] + params["beta"]


if __name__ == "__main__":
    d_model, n_head, d_head, receptive_size = 32, 4, 8, 5
    HD = n_head * d_head

    key = jax.random.PRNGKey(0)
    kp, kd = jax.random.split(key)
    k1, k2, k3, k4, k5 = jax.random.split(kp, 5)
    params = {
        "wq": jax.random.normal(k1, (d_model, HD), jnp.float32) * 0.1,
        "wk": jax.random.normal(k2, (d_model, HD), jnp.float32) * 0.1,
        "wv": jax.random.normal(k3, (d_model, HD), jnp.float32) * 0.1,
        "wo": jax.random.normal(k4, (HD, d_model), jnp.float32) * 0.1,
        "bo": jax.random.normal(k5, (1, d_model), jnp.float32) * 0.1,
        "gamma": jnp.ones((1, d_model), jnp.float32),   # nn.LayerNorm default init
        "beta": jnp.zeros((1, d_model), jnp.float32),
    }

    def run_case(B, T1, T2, data_key, matmul_dtype, block_b=None):
        kx, kc = jax.random.split(data_key)
        x = jax.random.normal(kx, (B, T1, d_model), jnp.float32)
        context = jax.random.normal(kc, (B, T2, d_model), jnp.float32)
        out = jax.block_until_ready(local_multi_head_attention(
            x, context, params, n_head=n_head, d_head=d_head,
            receptive_size=receptive_size, block_b=block_b,
            matmul_dtype=matmul_dtype))
        ref = jax.block_until_ready(_reference(
            x, context, params, n_head=n_head, d_head=d_head,
            receptive_size=receptive_size))
        assert out.shape == (B, T1, d_model)
        return out, ref

    kd1, kd2, kd3 = jax.random.split(kd, 3)

    # f32 matmuls: tight check vs. the f32 reference (tolerance also covers the
    # EUP approximate reciprocal used in the softmax normalization).
    out, ref = run_case(2, 8, 8, kd1, jnp.float32)
    assert bool(jnp.allclose(out, ref, atol=5e-3, rtol=5e-3)), "f32 mismatch vs reference"

    # block_b > 1 path: 4 batch elements packed 2-per-grid-step (grid stays >= 2).
    out4, ref4 = run_case(4, 8, 8, kd2, jnp.float32)
    assert bool(jnp.allclose(out4, ref4, atol=5e-3, rtol=5e-3)), "block_b>1 mismatch"

    # Cross-attention (T1 != T2): validates the in-kernel iota mask generation.
    outc, refc = run_case(2, 8, 16, kd3, jnp.float32)
    assert bool(jnp.allclose(outc, refc, atol=5e-3, rtol=5e-3)), "cross-attn mismatch"

    # bf16 matmul operands (v6e/v7x MXU path), f32 accumulation: looser check.
    outb, refb = run_case(2, 8, 8, kd1, jnp.bfloat16)
    assert bool(jnp.all(jnp.isfinite(outb)))
    assert bool(jnp.allclose(outb, refb, atol=1e-1, rtol=1e-1)), "bf16 mismatch"

    print("KERNEL_OK")
</pallas_src>

<mosaic_0001>
module attributes {stable_mosaic.version = 11 : i64} {
  func.func @_lmha_kernel(%arg0: i32, %arg1: memref<1x8x32xf32, #tpu.memory_space<vmem>>, %arg2: memref<1x8x32xf32, #tpu.memory_space<vmem>>, %arg3: memref<32x32xf32, #tpu.memory_space<vmem>>, %arg4: memref<32x64xf32, #tpu.memory_space<vmem>>, %arg5: memref<32x32xf32, #tpu.memory_space<vmem>>, %arg6: memref<1x32xf32, #tpu.memory_space<vmem>>, %arg7: memref<1x32xf32, #tpu.memory_space<vmem>>, %arg8: memref<1x32xf32, #tpu.memory_space<vmem>>, %arg9: memref<1x8x32xf32, #tpu.memory_space<vmem>>) attributes {dimension_semantics = [#tpu.dimension_semantics<parallel>], iteration_bounds = array<i64: 2>, scalar_prefetch = 0 : i64, scratch_operands = 0 : i64, tpu.core_type = #tpu.core_type<tc>, window_params = [{transform_indices = @transform_0, window_bounds = array<i64: 1, 8, 32>}, {transform_indices = @transform_1, window_bounds = array<i64: 1, 8, 32>}, {pipeline_mode = #tpu.pipeline_mode<synchronous>, transform_indices = @transform_2, window_bounds = array<i64: 32, 32>}, {pipeline_mode = #tpu.pipeline_mode<synchronous>, transform_indices = @transform_3, window_bounds = array<i64: 32, 64>}, {pipeline_mode = #tpu.pipeline_mode<synchronous>, transform_indices = @transform_4, window_bounds = array<i64: 32, 32>}, {pipeline_mode = #tpu.pipeline_mode<synchronous>, transform_indices = @transform_5, window_bounds = array<i64: 1, 32>}, {pipeline_mode = #tpu.pipeline_mode<synchronous>, transform_indices = @transform_6, window_bounds = array<i64: 1, 32>}, {pipeline_mode = #tpu.pipeline_mode<synchronous>, transform_indices = @transform_7, window_bounds = array<i64: 1, 32>}, {transform_indices = @transform_8, window_bounds = array<i64: 1, 8, 32>}]} {
    %c0 = arith.constant 0 : index
    %c0_0 = arith.constant 0 : index
    %c0_1 = arith.constant 0 : index
    %0 = vector.load %arg1[%c0, %c0_0, %c0_1] : memref<1x8x32xf32, #tpu.memory_space<vmem>>, vector<1x8x32xf32>
    %1 = vector.shape_cast %0 : vector<1x8x32xf32> to vector<8x32xf32>
    %c0_2 = arith.constant 0 : index
    %c0_3 = arith.constant 0 : index
    %c0_4 = arith.constant 0 : index
    %2 = vector.load %arg2[%c0_2, %c0_3, %c0_4] : memref<1x8x32xf32, #tpu.memory_space<vmem>>, vector<1x8x32xf32>
    %3 = vector.shape_cast %2 : vector<1x8x32xf32> to vector<8x32xf32>
    %c0_5 = arith.constant 0 : index
    %c0_6 = arith.constant 0 : index
    %4 = vector.load %arg3[%c0_5, %c0_6] : memref<32x32xf32, #tpu.memory_space<vmem>>, vector<32x32xf32>
    %cst = arith.constant dense<0.000000e+00> : vector<8x32xf32>
    %5 = tpu.matmul %1, %4, %cst {dimension_numbers = #tpu.dot_dimension_numbers<[1], [0], [0], [1], [0, 0, 1, 1], [], []>} : vector<8x32xf32>, vector<32x32xf32>, vector<8x32xf32> -> vector<8x32xf32>
    %c0_7 = arith.constant 0 : index
    %c0_8 = arith.constant 0 : index
    %6 = vector.load %arg4[%c0_7, %c0_8] : memref<32x64xf32, #tpu.memory_space<vmem>>, vector<32x64xf32>
    %cst_9 = arith.constant dense<0.000000e+00> : vector<8x64xf32>
    %7 = tpu.matmul %3, %6, %cst_9 {dimension_numbers = #tpu.dot_dimension_numbers<[1], [0], [0], [1], [0, 0, 1, 1], [], []>} : vector<8x32xf32>, vector<32x64xf32>, vector<8x64xf32> -> vector<8x64xf32>
    %8 = vector.extract_strided_slice %5 {offsets = [0, 0], sizes = [8, 8], strides = [1, 1]} : vector<8x32xf32> to vector<8x8xf32>
    %9 = vector.extract_strided_slice %5 {offsets = [0, 8], sizes = [8, 8], strides = [1, 1]} : vector<8x32xf32> to vector<8x8xf32>
    %10 = vector.extract_strided_slice %5 {offsets = [0, 16], sizes = [8, 8], strides = [1, 1]} : vector<8x32xf32> to vector<8x8xf32>
    %11 = vector.extract_strided_slice %5 {offsets = [0, 24], sizes = [8, 8], strides = [1, 1]} : vector<8x32xf32> to vector<8x8xf32>
    %12 = vector.shape_cast %8 : vector<8x8xf32> to vector<1x8x8xf32>
    %13 = vector.shape_cast %9 : vector<8x8xf32> to vector<1x8x8xf32>
    %14 = vector.shape_cast %10 : vector<8x8xf32> to vector<1x8x8xf32>
    %15 = vector.shape_cast %11 : vector<8x8xf32> to vector<1x8x8xf32>
    %16 = tpu.concatenate %12, %13, %14, %15 in 0 : vector<1x8x8xf32>, vector<1x8x8xf32>, vector<1x8x8xf32>, vector<1x8x8xf32> -> vector<4x8x8xf32>
    %17 = vector.extract_strided_slice %7 {offsets = [0, 0], sizes = [8, 8], strides = [1, 1]} : vector<8x64xf32> to vector<8x8xf32>
    %18 = vector.extract_strided_slice %7 {offsets = [0, 8], sizes = [8, 8], strides = [1, 1]} : vector<8x64xf32> to vector<8x8xf32>
    %19 = vector.extract_strided_slice %7 {offsets = [0, 16], sizes = [8, 8], strides = [1, 1]} : vector<8x64xf32> to vector<8x8xf32>
    %20 = vector.extract_strided_slice %7 {offsets = [0, 24], sizes = [8, 8], strides = [1, 1]} : vector<8x64xf32> to vector<8x8xf32>
    %21 = vector.shape_cast %17 : vector<8x8xf32> to vector<1x8x8xf32>
    %22 = vector.shape_cast %18 : vector<8x8xf32> to vector<1x8x8xf32>
    %23 = vector.shape_cast %19 : vector<8x8xf32> to vector<1x8x8xf32>
    %24 = vector.shape_cast %20 : vector<8x8xf32> to vector<1x8x8xf32>
    %25 = tpu.concatenate %21, %22, %23, %24 in 0 : vector<1x8x8xf32>, vector<1x8x8xf32>, vector<1x8x8xf32>, vector<1x8x8xf32> -> vector<4x8x8xf32>
    %26 = vector.extract_strided_slice %7 {offsets = [0, 32], sizes = [8, 8], strides = [1, 1]} : vector<8x64xf32> to vector<8x8xf32>
    %27 = vector.extract_strided_slice %7 {offsets = [0, 40], sizes = [8, 8], strides = [1, 1]} : vector<8x64xf32> to vector<8x8xf32>
    %28 = vector.extract_strided_slice %7 {offsets = [0, 48], sizes = [8, 8], strides = [1, 1]} : vector<8x64xf32> to vector<8x8xf32>
    %29 = vector.extract_strided_slice %7 {offsets = [0, 56], sizes = [8, 8], strides = [1, 1]} : vector<8x64xf32> to vector<8x8xf32>
    %30 = vector.shape_cast %26 : vector<8x8xf32> to vector<1x8x8xf32>
    %31 = vector.shape_cast %27 : vector<8x8xf32> to vector<1x8x8xf32>
    %32 = vector.shape_cast %28 : vector<8x8xf32> to vector<1x8x8xf32>
    %33 = vector.shape_cast %29 : vector<8x8xf32> to vector<1x8x8xf32>
    %34 = tpu.concatenate %30, %31, %32, %33 in 0 : vector<1x8x8xf32>, vector<1x8x8xf32>, vector<1x8x8xf32>, vector<1x8x8xf32> -> vector<4x8x8xf32>
    %35 = tpu.iota {dimensions = array<i32: 0>} : vector<8x8xi32>
    %36 = tpu.iota {dimensions = array<i32: 1>} : vector<8x8xi32>
    %37 = arith.subi %36, %35 : vector<8x8xi32>
    %c2_i32 = arith.constant 2 : i32
    %38 = vector.broadcast %c2_i32 : i32 to vector<8x8xi32>
    %39 = arith.addi %37, %38 : vector<8x8xi32>
    %c0_i32 = arith.constant 0 : i32
    %40 = vector.broadcast %c0_i32 : i32 to vector<8x8xi32>
    %41 = arith.cmpi sge, %39, %40 : vector<8x8xi32>
    %c5_i32 = arith.constant 5 : i32
    %42 = vector.broadcast %c5_i32 : i32 to vector<8x8xi32>
    %43 = arith.cmpi slt, %39, %42 : vector<8x8xi32>
    %44 = arith.andi %41, %43 : vector<8x8xi1>
    %c14_i32 = arith.constant 14 : i32
    %45 = vector.broadcast %c14_i32 : i32 to vector<8x8xi32>
    %46 = arith.addi %39, %45 : vector<8x8xi32>
    %c0_i32_10 = arith.constant 0 : i32
    %47 = vector.broadcast %c0_i32_10 : i32 to vector<8x8xi32>
    %48 = arith.cmpi sge, %46, %47 : vector<8x8xi32>
    %c5_i32_11 = arith.constant 5 : i32
    %49 = vector.broadcast %c5_i32_11 : i32 to vector<8x8xi32>
    %50 = arith.cmpi slt, %46, %49 : vector<8x8xi32>
    %51 = arith.andi %48, %50 : vector<8x8xi1>
    %52 = arith.ori %44, %51 : vector<8x8xi1>
    "tpu.trace_start"() <{level = 10 : i32, message = "gqd,gkd->gqk"}> : () -> ()
    %cst_12 = arith.constant dense<0.000000e+00> : vector<4x8x8xf32>
    %53 = tpu.matmul %16, %25, %cst_12 {dimension_numbers = #tpu.dot_dimension_numbers<[2], [2], [1], [1], [0, 0, 0, 1, 1, 1], [0], [0]>} : vector<4x8x8xf32>, vector<4x8x8xf32>, vector<4x8x8xf32> -> vector<4x8x8xf32>
    "tpu.trace_stop"() : () -> ()
    %cst_13 = arith.constant 0.353553385 : f32
    %54 = vector.broadcast %cst_13 : f32 to vector<4x8x8xf32>
    %55 = arith.mulf %53, %54 : vector<4x8x8xf32>
    %56 = vector.shape_cast %52 : vector<8x8xi1> to vector<1x8x8xi1>
    %cst_14 = arith.constant -1.000000e+09 : f32
    %57 = vector.shape_cast %56 : vector<1x8x8xi1> to vector<1x8x8xi1>
    %58 = vector.broadcast %57 : vector<1x8x8xi1> to vector<4x8x8xi1>
    %59 = vector.broadcast %cst_14 : f32 to vector<4x8x8xf32>
    %60 = arith.select %58, %55, %59 : vector<4x8x8xi1>, vector<4x8x8xf32>
    %cst_15 = arith.constant dense<0xFF800000> : vector<4x8xf32>
    %61 = vector.multi_reduction <maximumf>, %60, %cst_15 [2] : vector<4x8x8xf32> to vector<4x8xf32>
    %62 = vector.shape_cast %61 : vector<4x8xf32> to vector<4x8x1xf32>
    %63 = vector.broadcast %62 : vector<4x8x1xf32> to vector<4x8x8xf32>
    %64 = arith.subf %60, %63 : vector<4x8x8xf32>
    %65 = math.exp %64 : vector<4x8x8xf32>
    %cst_16 = arith.constant dense<0.000000e+00> : vector<4x8xf32>
    %66 = vector.multi_reduction <add>, %65, %cst_16 [2] : vector<4x8x8xf32> to vector<4x8xf32>
    %67 = vector.shape_cast %66 : vector<4x8xf32> to vector<4x8x1xf32>
    %68 = tpu.reciprocal %67 {approx = true} : vector<4x8x1xf32> -> vector<4x8x1xf32>
    %69 = vector.broadcast %68 : vector<4x8x1xf32> to vector<4x8x8xf32>
    %70 = arith.mulf %65, %69 : vector<4x8x8xf32>
    "tpu.trace_start"() <{level = 10 : i32, message = "gqk,gkd->gqd"}> : () -> ()
    %cst_17 = arith.constant dense<0.000000e+00> : vector<4x8x8xf32>
    %71 = tpu.matmul %70, %34, %cst_17 {dimension_numbers = #tpu.dot_dimension_numbers<[2], [1], [1], [2], [0, 0, 0, 1, 1, 2], [0], [0]>} : vector<4x8x8xf32>, vector<4x8x8xf32>, vector<4x8x8xf32> -> vector<4x8x8xf32>
    "tpu.trace_stop"() : () -> ()
    %72 = vector.extract_strided_slice %71 {offsets = [0, 0, 0], sizes = [1, 8, 8], strides = [1, 1, 1]} : vector<4x8x8xf32> to vector<1x8x8xf32>
    %73 = vector.shape_cast %72 : vector<1x8x8xf32> to vector<8x8xf32>
    %74 = vector.extract_strided_slice %71 {offsets = [1, 0, 0], sizes = [1, 8, 8], strides = [1, 1, 1]} : vector<4x8x8xf32> to vector<1x8x8xf32>
    %75 = vector.shape_cast %74 : vector<1x8x8xf32> to vector<8x8xf32>
    %76 = vector.extract_strided_slice %71 {offsets = [2, 0, 0], sizes = [1, 8, 8], strides = [1, 1, 1]} : vector<4x8x8xf32> to vector<1x8x8xf32>
    %77 = vector.shape_cast %76 : vector<1x8x8xf32> to vector<8x8xf32>
    %78 = vector.extract_strided_slice %71 {offsets = [3, 0, 0], sizes = [1, 8, 8], strides = [1, 1, 1]} : vector<4x8x8xf32> to vector<1x8x8xf32>
    %79 = vector.shape_cast %78 : vector<1x8x8xf32> to vector<8x8xf32>
    %80 = tpu.concatenate %73, %75, %77, %79 in 1 : vector<8x8xf32>, vector<8x8xf32>, vector<8x8xf32>, vector<8x8xf32> -> vector<8x32xf32>
    %c0_18 = arith.constant 0 : index
    %c0_19 = arith.constant 0 : index
    %81 = vector.load %arg5[%c0_18, %c0_19] : memref<32x32xf32, #tpu.memory_space<vmem>>, vector<32x32xf32>
    %cst_20 = arith.constant dense<0.000000e+00> : vector<8x32xf32>
    %82 = tpu.matmul %80, %81, %cst_20 {dimension_numbers = #tpu.dot_dimension_numbers<[1], [0], [0], [1], [0, 0, 1, 1], [], []>} : vector<8x32xf32>, vector<32x32xf32>, vector<8x32xf32> -> vector<8x32xf32>
    %c0_21 = arith.constant 0 : index
    %c0_22 = arith.constant 0 : index
    %83 = vector.load %arg6[%c0_21, %c0_22] : memref<1x32xf32, #tpu.memory_space<vmem>>, vector<1x32xf32>
    %84 = vector.broadcast %83 : vector<1x32xf32> to vector<8x32xf32>
    %85 = arith.addf %82, %84 : vector<8x32xf32>
    %86 = arith.addf %1, %85 : vector<8x32xf32>
    %cst_23 = arith.constant dense<0.000000e+00> : vector<8xf32>
    %87 = vector.multi_reduction <add>, %86, %cst_23 [1] : vector<8x32xf32> to vector<8xf32>
    %88 = vector.shape_cast %87 : vector<8xf32> to vector<8x1xf32>
    %cst_24 = arith.constant 3.200000e+01 : f32
    %89 = vector.broadcast %cst_24 : f32 to vector<8x1xf32>
    %90 = arith.divf %88, %89 : vector<8x1xf32>
    %91 = vector.broadcast %90 : vector<8x1xf32> to vector<8x32xf32>
    %92 = arith.subf %86, %91 : vector<8x32xf32>
    %93 = arith.mulf %92, %92 : vector<8x32xf32>
    %cst_25 = arith.constant dense<0.000000e+00> : vector<8xf32>
    %94 = vector.multi_reduction <add>, %93, %cst_25 [1] : vector<8x32xf32> to vector<8xf32>
    %95 = vector.shape_cast %94 : vector<8xf32> to vector<8x1xf32>
    %cst_26 = arith.constant 3.200000e+01 : f32
    %96 = vector.broadcast %cst_26 : f32 to vector<8x1xf32>
    %97 = arith.divf %95, %96 : vector<8x1xf32>
    %98 = vector.broadcast %90 : vector<8x1xf32> to vector<8x32xf32>
    %99 = arith.subf %86, %98 : vector<8x32xf32>
    %cst_27 = arith.constant 9.99999974E-6 : f32
    %100 = vector.broadcast %cst_27 : f32 to vector<8x1xf32>
    %101 = arith.addf %97, %100 : vector<8x1xf32>
    %102 = math.rsqrt %101 : vector<8x1xf32>
    %103 = vector.broadcast %102 : vector<8x1xf32> to vector<8x32xf32>
    %104 = arith.mulf %99, %103 : vector<8x32xf32>
    %c0_28 = arith.constant 0 : index
    %c0_29 = arith.constant 0 : index
    %105 = vector.load %arg7[%c0_28, %c0_29] : memref<1x32xf32, #tpu.memory_space<vmem>>, vector<1x32xf32>
    %106 = vector.broadcast %105 : vector<1x32xf32> to vector<8x32xf32>
    %107 = arith.mulf %104, %106 : vector<8x32xf32>
    %c0_30 = arith.constant 0 : index
    %c0_31 = arith.constant 0 : index
    %108 = vector.load %arg8[%c0_30, %c0_31] : memref<1x32xf32, #tpu.memory_space<vmem>>, vector<1x32xf32>
    %109 = vector.broadcast %108 : vector<1x32xf32> to vector<8x32xf32>
    %110 = arith.addf %107, %109 : vector<8x32xf32>
    %111 = vector.shape_cast %110 : vector<8x32xf32> to vector<1x8x32xf32>
    %c0_32 = arith.constant 0 : index
    %c0_33 = arith.constant 0 : index
    %c0_34 = arith.constant 0 : index
    %112 = vector.load %arg9[%c0_32, %c0_33, %c0_34] : memref<1x8x32xf32, #tpu.memory_space<vmem>>, vector<1x8x32xf32>
    tpu.vector_store %arg9[%c0_32, %c0_33, %c0_34], %111 {strides = array<i32>} : memref<1x8x32xf32, #tpu.memory_space<vmem>>, vector<1x8x32xf32>,
    return
  }
  func.func @transform_0(%arg0: i32) -> (i32, i32, i32) {
    %c0_i32 = arith.constant 0 : i32
    %c0_i32_0 = arith.constant 0 : i32
    %c0_i32_1 = arith.constant 0 : i32
    return %arg0, %c0_i32, %c0_i32_0 : i32, i32, i32
  }
  func.func @transform_1(%arg0: i32) -> (i32, i32, i32) {
    %c0_i32 = arith.constant 0 : i32
    %c0_i32_0 = arith.constant 0 : i32
    %c0_i32_1 = arith.constant 0 : i32
    return %arg0, %c0_i32, %c0_i32_0 : i32, i32, i32
  }
  func.func @transform_2(%arg0: i32) -> (i32, i32) {
    %c0_i32 = arith.constant 0 : i32
    %c0_i32_0 = arith.constant 0 : i32
    %c0_i32_1 = arith.constant 0 : i32
    return %c0_i32, %c0_i32_0 : i32, i32
  }
  func.func @transform_3(%arg0: i32) -> (i32, i32) {
    %c0_i32 = arith.constant 0 : i32
    %c0_i32_0 = arith.constant 0 : i32
    %c0_i32_1 = arith.constant 0 : i32
    return %c0_i32, %c0_i32_0 : i32, i32
  }
  func.func @transform_4(%arg0: i32) -> (i32, i32) {
    %c0_i32 = arith.constant 0 : i32
    %c0_i32_0 = arith.constant 0 : i32
    %c0_i32_1 = arith.constant 0 : i32
    return %c0_i32, %c0_i32_0 : i32, i32
  }
  func.func @transform_5(%arg0: i32) -> (i32, i32) {
    %c0_i32 = arith.constant 0 : i32
    %c0_i32_0 = arith.constant 0 : i32
    %c0_i32_1 = arith.constant 0 : i32
    return %c0_i32, %c0_i32_0 : i32, i32
  }
  func.func @transform_6(%arg0: i32) -> (i32, i32) {
    %c0_i32 = arith.constant 0 : i32
    %c0_i32_0 = arith.constant 0 : i32
    %c0_i32_1 = arith.constant 0 : i32
    return %c0_i32, %c0_i32_0 : i32, i32
  }
  func.func @transform_7(%arg0: i32) -> (i32, i32) {
    %c0_i32 = arith.constant 0 : i32
    %c0_i32_0 = arith.constant 0 : i32
    %c0_i32_1 = arith.constant 0 : i32
    return %c0_i32, %c0_i32_0 : i32, i32
  }
  func.func @transform_8(%arg0: i32) -> (i32, i32, i32) {
    %c0_i32 = arith.constant 0 : i32
    %c0_i32_0 = arith.constant 0 : i32
    %c0_i32_1 = arith.constant 0 : i32
    return %arg0, %c0_i32, %c0_i32_0 : i32, i32, i32
  }
}

</mosaic_0001>

<bundles_post_ra>
// kernel: tpu_custom_call.1
= control target key start
LH: loop header
LB: loop body
LE: loop exit
PB: predicated region body
PF: predicated region fallthrough
CT: control target
= control target key end

     0   :  { %s1670_s0 = inlined_call_operand.hbm [shape: f32[2,8,32], index: 0, kind: input, shape index: {}]   ;;  %s1671_s1 = inlined_call_operand.hbm [shape: f32[2,8,32], index: 1, kind: input, shape index: {}]   ;;  %s1672_s2 = inlined_call_operand.hbm [shape: f32[32,32], index: 2, kind: input, shape index: {}]   ;;  %s1673_s3 = inlined_call_operand.hbm [shape: f32[32,64], index: 3, kind: input, shape index: {}]   ;;  %s1674_s4 = inlined_call_operand.hbm [shape: f32[32,32], index: 4, kind: input, shape index: {}]   ;;  %s1675_s5 = inlined_call_operand.vmem [shape: f32[1,32], index: 5, kind: input, shape index: {}]   ;;  %s1676_s6 = inlined_call_operand.vmem [shape: f32[1,32], index: 6, kind: input, shape index: {}]   ;;  %s1677_s7 = inlined_call_operand.vmem [shape: f32[1,32], index: 7, kind: input, shape index: {}]   ;;  %s1678_s8 = inlined_call_operand.hbm [shape: f32[2,8,32], index: 8, kind: output, shape index: {}]  }
   0x1   :  { %1683 = sst [smem:[#allocation21_spill]] %s1672_s2 }
   0x2   :  { %1684 = sst [smem:[#allocation22_spill]] %s1673_s3 }
   0x3   :  { %1685 = sst [smem:[#allocation23_spill]] %s1674_s4 }
   0x4   :  { %13 = vsyncpa [#allocation3], 0 }
   0x5   :  { %15 = vsyncpa [#allocation3 + $0x1], 0 }
   0x6   :  { %16 = vsyncpa [#allocation6], 0 }
   0x7   :  { %18 = vsyncpa [#allocation6 + $0x1], 0 }
   0x8   :  { %19 = vsyncpa [#allocation9], 0 }
   0x9   :  { %20 = vsyncpa [#allocation4], 0 }
   0xa   :  { %22 = vsyncpa [#allocation4 + $0x1], 0  ;;  %s1421_s27 = smov 0   ;;  %s1423_s28 = smov 0  }
   0xb   :  { %s1425_s29 = smov 0   ;;  %s1427_s30 = smov 0  }
   0xc LB: > { %1686 = sst [smem:[#allocation17_spill]] %s1357_s29  ;;  %s1445_s12 = sadd.s32 4294967295, %s1361_s30   ;;  %s1361_s30 = sphi %s1427_s30, %s1702_s30   ;;  %s1357_s29 = sphi %s1425_s29, %s1704_s29   ;;  %s1353_s28 = sphi %s1423_s28, %s1706_s28   ;;  %s1349_s27 = sphi %s1421_s27, %s1705_s27  }
   0xd   : > { %1687 = sst [smem:[#allocation18_spill]] %s1361_s30  ;;  %p978_p0 = scmp.ge.s32.totalorder %s1361_s30, 1 }
   0xe   : > { %s1688_s2 = sld [smem:[#allocation21_spill]]  ;;  %p49_p1 = scmp.eq.s32.totalorder %s1445_s12, 0 }
   0xf   : > { %p237_p2 = scmp.lt.s32.totalorder %s1361_s30, 3  ;;  %s1363_s14 = smov [#allocation7]  }
  0x10   : > { %s250_s15 = sshll.u32 %s1363_s14, 4  ;;  %s1690_s3 = sld [smem:[#allocation22_spill]]  ;;  %s251_s15 = int_to_ptr.vmem [resolvable:$true] %s250_s15 }
  0x11   : > { %p1450_p3 = pnand %p978_p0, %p237_p2  ;;  %s1692_s4 = sld [smem:[#allocation23_spill]] }
  0x12   : > { %s1364_s23 = smov [#allocation8]   ;;  %s1365_s25 = smov 128  }
  0x13   : > { %p1031_p4 = pneg %p1450_p3  ;;  %s264_s24 = sshll.u32 %s1364_s23, 4  ;;  %s265_s24 = int_to_ptr.vmem [resolvable:$true] %s264_s24 }
  0x14   : > { %s248_s11 = sshll.u32 %s1688_s2, 4  ;;  %s1366_s26 = smov 8   ;;  %s249_s11 = int_to_ptr.hbm [resolvable:$true] %s248_s11 }
  0x15   : > { %p1462_p6 = pnand %p1031_p4, %p49_p1  ;;  %s1367_s9 = smov [#allocation10]  }
  0x16   : > { %s262_s18 = sshll.u32 %s1690_s3, 4  ;;  %s278_s10 = sshll.u32 %s1367_s9, 4  ;;  %s263_s18 = int_to_ptr.hbm [resolvable:$true] %s262_s18  ;;  %s279_s10 = int_to_ptr.vmem [resolvable:$true] %s278_s10 }
  0x17   : > { %s276_s22 = sshll.u32 %s1692_s4, 4  ;;  %s977_s14 = sadd.s32 4294967294, %s1361_s30   ;;  %s277_s22 = int_to_ptr.hbm [resolvable:$true] %s276_s22 }
  0x18   : > { %1034 = dma.hbm_to_vmem [thread:$0]  (!%p1462_p6), %s249_s11, 512, %s251_s15, [#allocation6], %s1365_s25, %s1365_s25, %s1366_s26  }
  0x19   : > { %1037 = dma.hbm_to_vmem [thread:$0]  (!%p1462_p6), %s263_s18, 512, %s265_s24, [#allocation9], %s1365_s25, %s1365_s25, %s1366_s26  }
  0x1a   : > { %1040 = dma.hbm_to_vmem [thread:$0]  (!%p1462_p6), %s277_s22, 512, %s279_s10, [#allocation9], %s1365_s25, %s1365_s25, %s1366_s26  }
  0x1b   : > { %s1477_s16 = sadd.s32 1, %s1361_s30   ;;  %s35_s17 = sadd.s32 1, %s1357_s29 }
  0x1c   : > { %1693 = sst [smem:[#allocation19_spill]] %s1477_s16  ;;  %s32_s11 = ssub.s32 %s1361_s30, %s1477_s16 }
  0x1d   : > { %p42_p7 = scmp.ne.s32.totalorder %s1357_s29, %s1353_s28  ;;  %p33_p8 = scmp.eq.s32.totalorder %s32_s11, 0 }
  0x1e   : > { %p43_p9 = scmp.eq.s32.totalorder %s1361_s30, 0  ;;  %p48_p10 = scmp.ne.s32.totalorder %s1353_s28, %s1349_s27 }
  0x1f   : > { %p224_p11 = scmp.eq.s32.totalorder %s1445_s12, 1  ;;  %p230_p2 = scmp.eq.s32.totalorder %s977_s14, 1 }
  0x20   : > { %s1489_s15 = scalar_select %p33_p8, %s1357_s29, %s35_s17  }
  0x21   : > { %p1491_p12 = por %p43_p9, %p42_p7  ;;  %p1497_p13 = por %p49_p1, %p48_p10 }
  0x22   : > { %1694 = sst [smem:[#allocation20_spill]] %s1489_s15  ;;  %p1501_p0 = por %p224_p11, %p42_p7 }
  0x23   : > { %p1055_p4 = scmp.lt.s32.totalorder %s1361_s30, 2  ;;  %s301_s21 = sand.u32 1, %s1357_s29  }
  0x24   : > { %p1507_p6 = por %p230_p2, %p48_p10  ;;  %s983_s23 = sshll.u32 %s301_s21, 3 }
  0x25   : > { %s984_s24 = sshll.u32 %s1361_s30, 3  ;;  %s305_s17 = scalar_lea.vmem [#allocation2], %s983_s23 }
  0x26   : > { %s309_s9 = scalar_lea.hbm %s1670_s0, %s984_s24  ;;  %s313_s11 = sshll.u32 %s305_s17, 4  ;;  %s314_s11 = int_to_ptr.vmem [resolvable:$true] %s313_s11 }
  0x27   : > { %s311_s10 = sshll.u32 %s309_s9, 4  ;;  %p1517_p7 = pnand %p1055_p4, %p1491_p12  ;;  %s312_s10 = int_to_ptr.hbm [resolvable:$true] %s311_s10 }
  0x28   : > { %s328_s4 = scalar_lea.hbm %s1671_s1, %s984_s24  ;;  %s320_s15 = sand.u32 1, %s1361_s30  }
  0x29   : > { %s302_s29 = scalar_lea.sflag [#allocation3], %s301_s21  ;;  %s1223_s25 = sshra.s32 %s312_s10, 4  ;;  %s1224_s25 = int_to_ptr.hbm [resolvable:$true] %s1223_s25 }
  0x2a   : > { %s1225_s26 = scalar_lea.hbm %s1224_s25, 8  ;;  %p1227_p9 = pneg %p1517_p7 }
  0x2b   : > { %p1226_p8 = scmp.ne.s32.totalorder %s1224_s25, %s1225_s26  ;;  %s1230_s17 = scalar_lea.hbm %s1670_s0, 16 }
  0x2c   : > { %p1231_p12 = scmp.lt.s32.totalorder %s1224_s25, %s1670_s0  ;;  %p1232_p2 = scmp.lt.s32.totalorder %s1230_s17, %s1225_s26 }
  0x2d   : > { %p1228_p10 = pnand %p1227_p9, %p1226_p8 }
  0x2e   : > { %p1233_p4 = por %p1232_p2, %p1231_p12 }
  0x2f   : > { %p1229_p11 = pneg %p1228_p10 }
  0x31   : > { %p1234_p5 = pnand %p1233_p4, %p1229_p11 }
  0x33   : > { %1237 = shalt.err (!%p1234_p5)
}
  0x34   : > { %1044 = dma.hbm_to_vmem [thread:$0]  (!%p1517_p7), %s312_s10, 128, %s314_s11, %s302_s29  }
  0x35   : > { %s330_s21 = sshll.u32 %s328_s4, 4  ;;  %s324_s24 = scalar_lea.vmem [#allocation5], %s983_s23  ;;  %s331_s21 = int_to_ptr.hbm [resolvable:$true] %s330_s21 }
  0x36   : > { %s332_s16 = sshll.u32 %s324_s24, 4  ;;  %s321_s30 = scalar_lea.sflag [#allocation6], %s320_s15  ;;  %s333_s16 = int_to_ptr.vmem [resolvable:$true] %s332_s16 }
  0x37   : > { %s1253_s18 = sshra.s32 %s331_s21, 4  ;;  %s1260_s17 = scalar_lea.hbm %s1671_s1, 16  ;;  %s1254_s18 = int_to_ptr.hbm [resolvable:$true] %s1253_s18 }
  0x38   : > { %s1255_s9 = scalar_lea.hbm %s1254_s18, 8  ;;  %p1261_p5 = scmp.lt.s32.totalorder %s1254_s18, %s1671_s1 }
  0x39   : > { %p1256_p8 = scmp.ne.s32.totalorder %s1254_s18, %s1255_s9  ;;  %p1262_p11 = scmp.lt.s32.totalorder %s1260_s17, %s1255_s9 }
  0x3b   : > { %p1258_p10 = pnand %p1256_p8, %p1227_p9  ;;  %p1263_p2 = por %p1262_p11, %p1261_p5 }
  0x3d   : > { %p1259_p12 = pneg %p1258_p10 }
  0x3f   : > { %p1264_p4 = pnand %p1263_p2, %p1259_p12 }
  0x41   : > { %1267 = shalt.err (!%p1264_p4)
}
  0x42   : > { %1047 = dma.hbm_to_vmem [thread:$0]  (!%p1517_p7), %s331_s21, 128, %s333_s16, %s321_s30  }
  0x43   : > { %341 = sbr.rel (%p1450_p3) target bundleno = 1402 (0x57a), region = 52  ;;  %s1552_s4 = sand.u32 (!%p1450_p3), 1, %s1353_s28  }
  0x44   : > { %s1555_s15 = sshll.u32 (!%p1450_p3), %s1552_s4, 3  ;;  %s344_s23 = scalar_lea.sflag (!%p1450_p3), [#allocation3], %s1552_s4 }
  0x45   : > { %s347_s10 = scalar_lea.vmem (!%p1450_p3), [#allocation2], %s1555_s15 }
  0x48   : > { %1328 = dma.done.wait (%p1497_p13), %s344_s23, 128  }
  0x49   : > { %1330 = vsyncadd (%p1497_p13), %s344_s23, 4294967168  ;;  %s353_s30 = sand.u32 1, %s1445_s12   ;;  %s357_s16 = scalar_lea.vmem [#allocation5], %s1555_s15 }
  0x4a   : > { %s354_s13 = scalar_lea.sflag [#allocation6], %s353_s30 }
  0x4b   : > { %1332 = dma.done.wait (%p1497_p13), %s354_s13, 128  }
  0x4c   : > { %1334 = vsyncadd (%p1497_p13), %s354_s13, 4294967168 }
  0x4d   : > { %1336 = dma.done.wait (%p49_p1), [#allocation6], 512  }
  0x4e   : > { %1338 = vsyncadd (%p49_p1), [#allocation6], 4294966784 }
  0x4f   : > { %1340 = dma.done.wait (%p49_p1), [#allocation9], 1024  }
  0x50   : > { %1342 = vsyncadd (%p49_p1), [#allocation9], 4294966272  ;;  %v416_v0 = vld [vmem:[#allocation7 + $0x18] sm:$0xff]  ;;  %v415_v2 = vld [vmem:[#allocation7 + $0x10] sm:$0xff]  ;;  %vm417_vm0 = vcmask 261120   ;;  %vm496_vm1 = vcmask 64512   ;;  %v482_v18 = vlaneseq }
  0x51   : > { %v444_v1 = vld [vmem:[#allocation8 + $0x18] sm:$0xff]  ;;  %433 = vmatpush.msra.mxu0 %v416_v0  ;;  %v443_v3 = vld [vmem:[#allocation8 + $0x10] sm:$0xff]  ;;  %v414_v4 = vld [vmem:[#allocation7 + $0x8] sm:$0xff]  ;;  %s1368_s19 = smov 112   ;;  %s1369_s11 = smov 120   ;;  %vm764_vm5 = vcmask 130048  }
  0x52   : > { %460 = vmatpush.msra.mxu1 %v444_v1  ;;  %v442_v5 = vld [vmem:[#allocation8 + $0x8] sm:$0xff]  ;;  %v413_v6 = vld [vmem:[#allocation7] sm:$0xff]  ;;  %v412_v9 = vld [vmem:[%s357_s16] sm:$0xff]  ;;  %s1370_s14 = smov 104   ;;  %v483_v19 = vshrl.u32 %v482_v18, 7  ;;  %v485_v20 = vand.u32 127, %v482_v18 }
  0x53   : > { %434 = vmatpush.msra.mxu0 %v415_v2  ;;  %v441_v7 = vld [vmem:[#allocation8] sm:$0xff]  ;;  %s1371_s3 = smov 96   ;;  %s1372_s21 = smov 16   ;;  %v770_v18 = vld [vmem:[#allocation10 + $0x10] sm:$0xff]  ;;  %vm766_vm6 = vcmask 195584  }
  0x54   : > { %461 = vmatpush.msra.mxu1 %v443_v3  ;;  %v1577_v8 = vld [vmem:[%s347_s10] sm:$0xff]  ;;  %v486_v21 = vsub.s32 %v485_v20, %v483_v19  ;;  %s1373_s24 = smov 8   ;;  %s1374_s18 = smov 24  }
  0x55   : > { %435 = vmatpush.msra.mxu0 %v414_v4  ;;  %v769_v19 = vld [vmem:[#allocation10 + $0x8] sm:$0xff]  ;;  %v768_v20 = vld [vmem:[#allocation10] sm:$0xff]  ;;  %s1010_s26 = sshll.u32 %s1445_s12, 3  ;;  %s410_s12 = scalar_lea.vmem [#allocation11], %s1555_s15 }
  0x56   : > { %462 = vmatpush.msra.mxu1 %v442_v5  ;;  %v487_v23 = vadd.s32 2, %v486_v21  ;;  %s851_s10 = scalar_lea.hbm %s1678_s8, %s1010_s26  ;;  %s853_s16 = sshll.u32 %s410_s12, 4  ;;  %s854_s16 = int_to_ptr.vmem [resolvable:$true] %s853_s16 }
  0x57   : > { %436 = vmatpush.msra.mxu0 %v413_v6  ;;  %s1303_s15 = scalar_lea.hbm %s1678_s8, 16 }
  0x58   : > { %463 = vmatpush.msra.mxu1 %v441_v7  ;;  %994 = vmatmul.msk.f32.vlgmr.msra.gmra.mxu0 %vm417_vm0, %v1577_v8  ;;  %vm488_vm2 = vcmp.ge.s32.totalorder %v487_v23, 0  ;;  %vm489_vm3 = vcmp.lt.s32.totalorder %v487_v23, 5 }
  0x59   : > { %995 = vmatmul.msk.f32.vlgmr.msra.gmra.mxu1 %vm417_vm0, %v412_v9  ;;  %vm490_vm4 = vmand %vm488_vm2, %vm489_vm3 }
  0xd5   : > { %v438_v10 = vpop.f32.mrf.mxu0 }
  0xd6   : > { %v1582_v11 = vpop.f32.mrf.mxu1  ;;  %471 = vrot.lane.b32.xlu2 %v438_v10, %s1368_s19 }
  0xd7   : > { %478 = vrot.lane.b32.xlu1 %v1582_v11, %s1368_s19  ;;  %476 = vrot.lane.b32.xlu0 %v1582_v11, %s1369_s11  ;;  %s855_s19 = sshll.u32 %s851_s10, 4  ;;  %s856_s19 = int_to_ptr.hbm [resolvable:$true] %s855_s19 }
  0xd8   : > { %996 = vmatpush.xpose.msk.msra.mxu2 %vm496_vm1, %v1582_v11 }
  0xdb   : > { %997 = vmatmul.msk.f32.vlgmr.msra.gmra.mxu2 %vm496_vm1, %v438_v10 }
  0xde   : > { %473 = vrot.lane.b32.xlu2 %v438_v10, %s1370_s14 }
  0xdf   : > { %480 = vrot.lane.b32.xlu1 %v1582_v11, %s1370_s14  ;;  %469 = vrot.lane.b32.xlu0 %v438_v10, %s1369_s11  ;;  %s841_s11 = scalar_lea.sflag [#allocation4], %s1552_s4  ;;  %s1297_s14 = sshra.s32 %s856_s19, 4  ;;  %s1298_s14 = int_to_ptr.hbm [resolvable:$true] %s1297_s14 }
  0xe0   : > { %p1304_p7 = scmp.lt.s32.totalorder %s1298_s14, %s1678_s8 }
 0x130   : > { %v472_v14 = vpop.permute.xlu2 %471 }
 0x138   : > { %v474_v17 = vpop.permute.xlu2 %473 }
 0x149   : > { %v1590_v12 = vpop.permute.xlu1 %478  ;;  %v1592_v13 = vpop.permute.xlu0 %476 }
 0x14a   : > { %998 = vmatpush.xpose.msk.msra.mxu3 %vm496_vm1, %v1592_v13  ;;  %1000 = vmatpush.xpose.msk.msrb.mxu2 %vm496_vm1, %v1590_v12 }
 0x14d   : > { %1001 = vmatmul.msk.f32.vlgmr.msrb.gmra.mxu2 %vm496_vm1, %v472_v14 }
 0x151   : > { %v1599_v15 = vpop.permute.xlu1 %480  ;;  %v470_v16 = vpop.permute.xlu0 %469 }
 0x152   : > { %999 = vmatmul.msk.f32.vlgmr.msra.gmra.mxu3 %vm496_vm1, %v470_v16  ;;  %v1105_v59 = vpack.i.bf16 %v1599_v15, %v1590_v12 }
 0x153   : > { %1002 = vmatpush.xpose.msk.msrb.mxu3 %vm496_vm1, %v1599_v15 }
 0x15a   : > { %1003 = vmatmul.msk.f32.vlgmr.msrb.gmra.mxu3 %vm496_vm1, %v474_v17  ;;  %v771_v17 = vld [vmem:[#allocation10 + $0x18] sm:$0xff] }
 0x15e   : > { %v518_v22 = vpop.f32.mrf.mxu2 }
 0x15f   : > { %v593_v32 = vmul.f32 0.35355338, %v518_v22 }
 0x161   : > { %v599_v35 = vsel %vm490_vm4, %v593_v32, -1e+09 }
 0x162   : > { %v603_v38 = vsel %vm496_vm1, %v599_v35, -inf }
 0x1d0   : > { %v566_v24 = vpop.f32.mrf.mxu2 }
 0x1d1   : > { %v595_v25 = vmul.f32 0.35355338, %v566_v24 }
 0x1d3   : > { %v601_v26 = vsel %vm490_vm4, %v595_v25, -1e+09 }
 0x1d4   : > { %v609_v27 = vsel %vm496_vm1, %v601_v26, -inf }
 0x1d5   : > { %v542_v28 = vpop.f32.mrf.mxu3  ;;  %610 = vmax.xlane.f32.xlu0 %v609_v27 }
 0x1d6   : > { %v594_v29 = vmul.f32 0.35355338, %v542_v28  ;;  %v1110_v28 = vld [vmem:[%s1675_s5] ss:$0 sm:$0xff] }
 0x1d8   : > { %v600_v30 = vsel %vm490_vm4, %v594_v29, -1e+09 }
 0x1d9   : > { %v606_v31 = vsel %vm496_vm1, %v600_v30, -inf }
 0x1da   : > { %607 = vmax.xlane.f32.xlu2 %v606_v31 }
 0x1dd   : > { %v590_v33 = vpop.f32.mrf.mxu3 }
 0x1de   : > { %v596_v34 = vmul.f32 0.35355338, %v590_v33  ;;  %v1375_v33 = vmov 32.0  }
 0x1e0   : > { %v602_v36 = vsel %vm490_vm4, %v596_v34, -1e+09 }
 0x1e1   : > { %v612_v37 = vsel %vm496_vm1, %v602_v36, -inf }
 0x1e2   : > { %613 = vmax.xlane.f32.xlu1 %v612_v37  ;;  %604 = vmax.xlane.f32.xlu2 %v603_v38 }
 0x248   : > { %v611_v39 = vpop.xlane.xlu0 %610 }
 0x249   : > { %v617_v40 = vsub.f32 %v601_v26, %v611_v39 }
 0x24b   : > { %v623_v41 = vmul.f32 1.442695, %v617_v40 }
 0x24d   : > { %1113 = vpow2.f32 %v623_v41  ;;  %v608_v42 = vpop.xlane.xlu2 %607 }
 0x24e   : > { %v616_v43 = vsub.f32 %v600_v30, %v608_v42 }
 0x250   : > { %v621_v44 = vmul.f32 1.442695, %v616_v43 }
 0x252   : > { %1115 = vpow2.f32 %v621_v44 }
 0x253   : > { %v1114_v45 = vpop.eup %1113 }
 0x254   : > { %v633_v46 = vsel %vm496_vm1, %v1114_v45, 0.0 }
 0x255   : > { %v614_v47 = vpop.xlane.xlu1 %613  ;;  %v605_v48 = vpop.xlane.xlu2 %604  ;;  %634 = vadd.xlane.f32.xlu0 %v633_v46 }
 0x256   : > { %v618_v49 = vsub.f32 %v602_v36, %v614_v47  ;;  %v615_v50 = vsub.f32 %v599_v35, %v605_v48 }
 0x258   : > { %v1116_v51 = vpop.eup %1115  ;;  %v625_v52 = vmul.f32 1.442695, %v618_v49  ;;  %v619_v53 = vmul.f32 1.442695, %v615_v50 }
 0x259   : > { %v630_v54 = vsel %vm496_vm1, %v1116_v51, 0.0 }
 0x25a   : > { %1117 = vpow2.f32 %v625_v52  ;;  %631 = vadd.xlane.f32.xlu2 %v630_v54 }
 0x25b   : > { %1119 = vpow2.f32 %v619_v53  ;;  %v1111_v53 = vld [vmem:[%s1676_s6] ss:$0 sm:$0xff] }
 0x260   : > { %v1118_v55 = vpop.eup %1117 }
 0x261   : > { %v1120_v56 = vpop.eup %1119  ;;  %v636_v57 = vsel %vm496_vm1, %v1118_v55, 0.0 }
 0x262   : > { %637 = vadd.xlane.f32.xlu1 %v636_v57  ;;  %v627_v58 = vsel %vm496_vm1, %v1120_v56, 0.0 }
 0x263   : > { %628 = vadd.xlane.f32.xlu2 %v627_v58 }
 0x269   : > { %1106 = vrot.lane.b32.xlu0 %v1105_v59, %s1371_s3 }
 0x27b   : > { %647 = vrot.lane.b32.xlu2 %v1582_v11, %s1371_s3  ;;  %673 = vrot.lane.b32.xlu1 %v1592_v13, %s1371_s3  ;;  %s1299_s3 = scalar_lea.hbm %s1298_s14, 8 }
 0x27c   : > { %p1300_p1 = scmp.ne.s32.totalorder %s1298_s14, %s1299_s3  ;;  %p1305_p9 = scmp.lt.s32.totalorder %s1303_s15, %s1299_s3 }
 0x27e   : > { %p1301_p3 = pnand %p1300_p1, %p1501_p0  ;;  %p1306_p8 = por %p1305_p9, %p1304_p7 }
 0x280   : > { %p1302_p13 = pneg %p1301_p3 }
 0x282   : > { %p1307_p10 = pnand %p1306_p8, %p1302_p13 }
 0x2c8   : > { %v635_v61 = vpop.xlane.xlu0 %634 }
 0x2c9   : > { %1121 = vrcp.f32 %v635_v61 }
 0x2cd   : > { %v632_v60 = vpop.xlane.xlu2 %631 }
 0x2cf   : > { %v1122_v0 = vpop.eup %1121 }
 0x2d0   : > { %v645_v6 = vmul.f32 %v1122_v0, %v1114_v45 }
 0x2d5   : > { %v638_v62 = vpop.xlane.xlu1 %637 }
 0x2d6   : > { %1123 = vrcp.f32 %v638_v62  ;;  %v629_v63 = vpop.xlane.xlu2 %628 }
 0x2d7   : > { %1125 = vrcp.f32 %v629_v63 }
 0x2d8   : > { %1127 = vrcp.f32 %v632_v60 }
 0x2d9   : > { %1129 = vrcp.f32 %v1375_v33 }
 0x2db   : > { %v1107_v1 = vpop.permute.xlu0 %1106 }
 0x2dc   : > { %v1124_v2 = vpop.eup %1123  ;;  %v1109_v3 = vunpack.i.h.bf16 %v1107_v1  ;;  %v1108_v4 = vunpack.i.l.bf16 %v1107_v1 }
 0x2dd   : > { %v1126_v5 = vpop.eup %1125  ;;  %v646_v7 = vmul.f32 %v1124_v2, %v1118_v55 }
 0x2de   : > { %v648_v9 = vpop.permute.xlu2 %647  ;;  %720 = vmatpush.msra.mxu2 %v1108_v4  ;;  %746 = vmatpush.msra.mxu3 %v1109_v3  ;;  %v643_v10 = vmul.f32 %v1126_v5, %v1120_v56  ;;  %v1128_v11 = vpop.eup %1127  ;;  %v1112_v56 = vld [vmem:[%s1677_s7] ss:$0 sm:$0xff] }
 0x2df   : > { %668 = vmatpush.msrb.mxu0 %v648_v9  ;;  %1006 = vmatmul.msk.f32.vlgmr.msra.gmra.mxu2 %vm496_vm1, %v645_v6  ;;  %v644_v13 = vmul.f32 %v1128_v11, %v1116_v51  ;;  %v1130_v34 = vpop.eup %1129 }
 0x2e0   : > { %1004 = vmatmul.msk.f32.vlgmr.msrb.gmra.mxu0 %vm496_vm1, %v643_v10  ;;  %1007 = vmatmul.msk.f32.vlgmr.msra.gmra.mxu3 %vm496_vm1, %v646_v7  ;;  %v804_v35 = vmul.f32 32.0, %v1130_v34  ;;  %vm808_vm7 = vweird.f32 %v1130_v34 }
 0x2e1   : > { %791 = vmatpush.msra.mxu0 %v771_v17 }
 0x2e2   : > { %v805_v36 = vsub.f32 1.0, %v804_v35 }
 0x2e3   : > { %792 = vmatpush.msra.mxu0 %v770_v18 }
 0x2e4   : > { %v806_v37 = vmul.f32 %v1130_v34, %v805_v36 }
 0x2e5   : > { %793 = vmatpush.msra.mxu0 %v769_v19 }
 0x2e6   : > { %v807_v38 = vadd.f32 %v1130_v34, %v806_v37 }
 0x2e7   : > { %794 = vmatpush.msra.mxu0 %v768_v20 }
 0x2e8   : > { %v809_v39 = vsel %vm808_vm7, %v1130_v34, %v807_v38 }
 0x2ed   : > { %v674_v12 = vpop.permute.xlu1 %673 }
 0x2ee   : > { %694 = vmatpush.msrb.mxu1 %v674_v12 }
 0x2ef   : > { %1005 = vmatmul.msk.f32.vlgmr.msrb.gmra.mxu1 %vm496_vm1, %v644_v13 }
 0x35d   : > { %v670_v22 = vpop.f32.mrf.mxu0 }
 0x362   : > { %v722_v14 = vpop.f32.mrf.mxu2 }
 0x363   : > { %756 = vrot.lane.b32.xlu1 %v722_v14, %s1372_s21  ;;  %v748_v16 = vpop.f32.mrf.mxu3 }
 0x36c   : > { %v696_v15 = vpop.f32.mrf.mxu1 }
 0x36d   : > { %752 = vrot.lane.b32.xlu0 %v696_v15, %s1373_s24 }
 0x375   : > { %760 = vrot.lane.b32.xlu0 %v748_v16, %s1374_s18 }
 0x3d5   : > { %v757_v24 = vpop.permute.xlu1 %756 }
 0x3df   : > { %v753_v21 = vpop.permute.xlu0 %752 }
 0x3e0   : > { %v763_v23 = vsel %vm496_vm1, %v670_v22, %v753_v21 }
 0x3e1   : > { %v765_v26 = vsel %vm764_vm5, %v763_v23, %v757_v24 }
 0x3e7   : > { %v761_v25 = vpop.permute.xlu0 %760 }
 0x3e8   : > { %v767_v27 = vsel %vm766_vm6, %v765_v26, %v761_v25 }
 0x3e9   : > { %1008 = vmatmul.msk.f32.vlgmr.msra.gmra.mxu0 %vm417_vm0, %v767_v27 }
 0x466   : > { %v796_v29 = vpop.f32.mrf.mxu0 }
 0x467   : > { %v797_v30 = vadd.f32 %v1110_v28, %v796_v29 }
 0x469   : > { %v799_v31 = vadd.f32 %v797_v30, %v1577_v8 }
 0x46b   : > { %v800_v32 = vsel %vm417_vm0, %v799_v31, 0.0 }
 0x46c   : > { %801 = vadd.xlane.f32.xlu1 %v800_v32 }
 0x4df   : > { %v802_v40 = vpop.xlane.xlu1 %801 }
 0x4e0   : > { %v810_v41 = vmul.f32 %v809_v39, %v802_v40 }
 0x4e2   : > { %v811_v42 = vsub.f32 %v799_v31, %v810_v41 }
 0x4e4   : > { %v812_v43 = vmul.f32 %v811_v42, %v811_v42 }
 0x4e6   : > { %v813_v44 = vsel %vm417_vm0, %v812_v43, 0.0 }
 0x4e7   : > { %814 = vadd.xlane.f32.xlu0 %v813_v44 }
 0x55a   : > { %v815_v8 = vpop.xlane.xlu0 %814 }
 0x55b   : > { %v816_v45 = vmul.f32 %v815_v8, %v809_v39 }
 0x55d   : > { %v817_v46 = vadd.f32 1e-05, %v816_v45 }
 0x55f   : > { %1131 = vrsqrt.f32 %v817_v46  ;;  %vm824_vm9 = vweird.f32 %v817_v46 }
 0x565   : > { %v1132_v47 = vpop.eup %1131 }
 0x566   : > { %v819_v48 = vmul.f32 %v1132_v47, %v817_v46  ;;  %vm825_vm8 = vweird.f32 %v1132_v47 }
 0x567   : > { %vm826_vm10 = vmor %vm824_vm9, %vm825_vm8 }
 0x568   : > { %v820_v49 = vmul.f32 %v1132_v47, %v819_v48 }
 0x56a   : > { %v821_v50 = vmul.f32 0.5, %v820_v49 }
 0x56c   : > { %v822_v51 = vsub.f32 1.5, %v821_v50 }
 0x56e   : > { %v823_v52 = vmul.f32 %v1132_v47, %v822_v51 }
 0x570   : > { %v827_v54 = vsel %vm826_vm10, %v1132_v47, %v823_v52 }
 0x571   : > { %v828_v55 = vmul.f32 %v827_v54, %v811_v42 }
 0x573   : > { %v833_v57 = vmul.f32 %v1111_v53, %v828_v55 }
 0x575   : > { %v838_v58 = vadd.f32 %v1112_v56, %v833_v57 }
 0x577   : > { %839 = vst.msk [vmem:[%s410_s12] sm:$0xff] %vm417_vm0, %v838_v58 }
 0x578   : > { %1310 = shalt.err (!%p1307_p10)
}
 0x579   : > { %1029 = dma.vmem_to_hbm [thread:$0]  (%p1501_p0), %s854_s16, 128, %s856_s19, %s841_s11  }
 0x57a PF: > { %s1700_s4 = sld [smem:[#allocation18_spill]]  ;;  %s867_s25 = sand.u32 1, %s1349_s27  }
 0x57b   : > { %s868_s26 = scalar_lea.sflag [#allocation4], %s867_s25 }
 0x580   : > { %p1701_p12 = scmp.ge.s32.totalorder %s1700_s4, 2 }
 0x582   : > { %p1049_p5 = pnand %p1701_p12, %p1507_p6 }
 0x584   : > { %p1050_p11 = pneg %p1049_p5 }
 0x586   : > { %1344 = dma.done.wait (%p1050_p11), %s868_s26, 128  }
 0x587   : > { %1346 = vsyncadd (%p1050_p11), %s868_s26, 4294967168  ;;  %s1702_s30 = sld [smem:[#allocation19_spill]]  ;;  %s1705_s27 = smov %s1353_s28 }
 0x588   : > { %s1703_s17 = sld [smem:[#allocation17_spill]] }
 0x589   : > { %s1704_s29 = sld [smem:[#allocation20_spill]] }
 0x58d   : > { %p25_p2 = scmp.ge.s32.totalorder %s1702_s30, 4  }
 0x58e   : > { %s1706_s28 = smov %s1703_s17 }
 0x58f   :  { %27 = sbr.rel (!%p25_p2) target bundleno = 12 (0xc), region = 122 }
 0x594   :  { %874 = vsyncpa [#allocation3], 1 }
 0x595   :  { %876 = vsyncpa [#allocation3 + $0x1], 1 }
 0x596   :  { %877 = vsyncpa [#allocation6], 1 }
 0x597   :  { %879 = vsyncpa [#allocation6 + $0x1], 1 }
 0x598   :  { %880 = vsyncpa [#allocation9], 1 }
 0x599   :  { %881 = vsyncpa [#allocation4], 1 }
 0x59a   :  { %883 = vsyncpa [#allocation4 + $0x1], 1 }

</bundles_post_ra>
